<compile_context>
chip_gen: v5e
topology: v5e:2x2
jax: 0.10.0
libtpu: 0.0.40
codegen_flags: <defaults>
</compile_context>

<pallas_src>
import functools

import jax
import jax.numpy as jnp
from jax.experimental import pallas as pl
from jax.experimental.pallas import tpu as pltpu

KSIZE = 3          # 3x3 convolution
MAX_BATCH_TILE = 8  # images per grid step (fills the 8 sublanes of the epilogue)


def _round_up(x, m):
    return ((x + m - 1) // m) * m


# ----------------------------------------------------------------------------
# Fused kernel: one K=9C conv matmul + bias + ReLU + matmul global-avg-pool
#               + decoder + argmax (+ optional label-smoothing loss),
#               processing BT images per grid step, blocked outputs.
# ----------------------------------------------------------------------------
def _fused_kernel(*refs, BT, L, Lp, smoothing, with_loss):
    if with_loss:
        (x_ref, labels_ref, pool_ref, wc_ref, bc_ref, wd_ref, bd_ref,
         logits_ref, pred_ref, loss_ref) = refs
    else:
        (x_ref, pool_ref, wc_ref, bc_ref, wd_ref, bd_ref,
         logits_ref, pred_ref) = refs

    # ---- conv as a single (BT*HW, 9C) @ (9C, F) matmul (bf16 MXU, f32 acc) ---
    h = jnp.dot(x_ref[...], wc_ref[...],
                preferred_element_type=jnp.float32)              # (BT*HW, F) f32
    h = jnp.maximum(h + bc_ref[...], 0.0)                        # bias + ReLU

    # ---- global average pool as an MXU matmul (block-diag 1/HW operator) ----
    pooled = jnp.dot(pool_ref[...], h,
                     preferred_element_type=jnp.float32)         # (BT, F) f32

    # ---- decoder -------------------------------------------------------------
    logits = jnp.dot(pooled.astype(jnp.bfloat16), wd_ref[...],
                     preferred_element_type=jnp.float32) + bd_ref[...]   # (BT, Lp)
    logits_ref[...] = logits                                     # lane-dense store

    # ---- argmax over real classes (first index of the max) -------------------
    col = jax.lax.broadcasted_iota(jnp.int32, (BT, Lp), 1)
    valid = col < L
    zm = jnp.where(valid, logits, -1e30)                         # mask padded classes
    m = jnp.max(zm, axis=-1, keepdims=True)                      # (BT, 1)
    idx = jnp.where(zm >= m, col, Lp)
    pred = jnp.min(idx, axis=-1, keepdims=True)                  # (BT, 1) int32
    pred_ref[...] = jnp.broadcast_to(pred, (BT, Lp))

    if with_loss:
        # ---- per-example label-smoothing loss (mean taken on the host) ------
        lse = jnp.log(jnp.sum(jnp.exp(zm - m), axis=-1, keepdims=True)) + m
        logp = zm - lse
        confidence = 1.0 - smoothing
        off_value = (smoothing / (L - 1)) if L > 1 else 0.0
        true_dist = jnp.where(col == labels_ref[...], confidence,
                              jnp.where(valid, off_value, 0.0))
        ex_loss = jnp.sum(-true_dist * logp, axis=-1, keepdims=True)     # (BT, 1)
        loss_ref[...] = jnp.broadcast_to(ex_loss, (BT, Lp))


# ----------------------------------------------------------------------------
# Model wrapper
# ----------------------------------------------------------------------------
class ImageModelPallas:
    def __init__(self, in_ch=4, feat=128, label_num=8, smoothing=0.1,
                 key=jax.random.PRNGKey(0)):
        self.in_ch, self.feat, self.label_num = in_ch, feat, label_num
        self.smoothing = float(smoothing)
        self.label_pad = _round_up(label_num, 128)       # lane-dense class dim
        kc = KSIZE * KSIZE * in_ch
        self.kc_pad = _round_up(kc, 16)                  # bf16-friendly K padding
        k0, k1, k2, k3 = jax.random.split(key, 4)
        # conv weight stored tap-major: (k*k, C_in, FEAT)
        self.wc = jax.random.normal(k0, (KSIZE * KSIZE, in_ch, feat), jnp.float32) * 0.1
        self.bc = jax.random.normal(k1, (1, feat), jnp.float32) * 0.1
        self.wd = jax.random.normal(k2, (feat, label_num), jnp.float32) * 0.1
        self.bd = jax.random.normal(k3, (1, label_num), jnp.float32) * 0.1
        # packed (tap*channel, F) conv weight, zero-padded K, bf16 for the MXU
        wc_flat = self.wc.reshape(kc, feat)
        self.wc_k = (jnp.zeros((self.kc_pad, feat), jnp.float32)
                     .at[:kc].set(wc_flat).astype(jnp.bfloat16))
        # zero-padded decoder params; padded classes are masked inside the kernel
        self.wd_p = (jnp.zeros((feat, self.label_pad), jnp.float32)
                     .at[:, :label_num].set(self.wd).astype(jnp.bfloat16))
        self.bd_p = (jnp.zeros((1, self.label_pad), jnp.float32)
                     .at[:, :label_num].set(self.bd))

    # Host-side prep: NCHW -> im2col patches (Bp*HW, 9C_pad) bf16 + pool operator.
    def _prep(self, x, bt):
        B, C, H, W = x.shape
        HW = H * W
        kc = KSIZE * KSIZE * C
        bp = _round_up(B, bt)
        xt = jnp.transpose(x.astype(jnp.float32), (0, 2, 3, 1))            # (B,H,W,C)
        xp = jnp.pad(xt, ((0, 0), (1, 1), (1, 1), (0, 0)))                 # (B,H+2,W+2,C)
        taps = [xp[:, di:di + H, dj:dj + W, :]
                for di in range(KSIZE) for dj in range(KSIZE)]
        patches = jnp.stack(taps, axis=3).reshape(B, HW, kc)               # (B,HW,9C)
        patches = jnp.pad(patches, ((0, bp - B), (0, 0), (0, self.kc_pad - kc)))
        patches = patches.reshape(bp * HW, self.kc_pad).astype(jnp.bfloat16)
        # block-diagonal masked-average pooling operator for one batch tile
        pool = jnp.kron(jnp.eye(bt, dtype=jnp.float32),
                        jnp.full((1, HW), 1.0 / HW, jnp.float32))          # (bt, bt*HW)
        return patches, pool, bp, HW

    def _run(self, x, labels=None):
        B, C, H, W = x.shape
        assert C == self.in_ch
        F, L, Lp = self.feat, self.label_num, self.label_pad
        bt = min(B, MAX_BATCH_TILE)
        patches, pool, bp, HW = self._prep(x, bt)
        with_loss = labels is not None
        tile_rows = bt * HW

        kernel = functools.partial(
            _fused_kernel, BT=bt, L=L, Lp=Lp,
            smoothing=self.smoothing, with_loss=with_loss)

        in_specs = [pl.BlockSpec((tile_rows, self.kc_pad), lambda b: (b, 0))]   # patches (pipelined)
        inputs = [patches]
        if with_loss:
            lab = jnp.pad(labels.astype(jnp.int32), (0, bp - B))
            lab2d = jnp.broadcast_to(lab[:, None], (bp, Lp))
            in_specs.append(pl.BlockSpec((bt, Lp), lambda b: (b, 0)))           # labels (pipelined)
            inputs.append(lab2d)
        in_specs += [
            pl.BlockSpec((bt, tile_rows), lambda b: (0, 0)),       # pool operator (resident)
            pl.BlockSpec((self.kc_pad, F), lambda b: (0, 0)),      # packed conv weight
            pl.BlockSpec((1, F), lambda b: (0, 0)),                # conv bias
            pl.BlockSpec((F, Lp), lambda b: (0, 0)),               # decoder weight (padded)
            pl.BlockSpec((1, Lp), lambda b: (0, 0)),               # decoder bias (padded)
        ]
        inputs += [pool, self.wc_k, self.bc, self.wd_p, self.bd_p]

        out_specs = [pl.BlockSpec((bt, Lp), lambda b: (b, 0)),     # logits (blocked)
                     pl.BlockSpec((bt, Lp), lambda b: (b, 0))]     # pred   (blocked)
        out_shape = [jax.ShapeDtypeStruct((bp, Lp), jnp.float32),
                     jax.ShapeDtypeStruct((bp, Lp), jnp.int32)]
        if with_loss:
            out_specs.append(pl.BlockSpec((bt, Lp), lambda b: (b, 0)))
            out_shape.append(jax.ShapeDtypeStruct((bp, Lp), jnp.float32))

        outs = pl.pallas_call(
            kernel,
            out_shape=tuple(out_shape),
            grid_spec=pltpu.PrefetchScalarGridSpec(
                num_scalar_prefetch=0,
                grid=(bp // bt,),
                in_specs=in_specs,
                out_specs=out_specs,
            ),
            compiler_params=pltpu.CompilerParams(
                # no cross-step accumulation -> batch axis is parallel (2 TCs on v7x)
                dimension_semantics=("parallel",),
                vmem_limit_bytes=32 * 1024 * 1024),
        )(*inputs)

        logits = outs[0][:B, :L]
        pred = outs[1][:B, 0]
        if with_loss:
            loss = jnp.mean(outs[2][:B, 0])
            return loss, pred, logits
        return pred, logits

    def forward(self, input_image):
        _, logits = self._run(input_image)       # logits-only kernel variant
        return logits

    def compute_loss(self, input_image, image_label):
        return self._run(input_image, image_label)

    def predict(self, input_image):
        return self._run(input_image)            # logits-only kernel variant


# ----------------------------------------------------------------------------
# Pure-JAX references (numerical sanity check of the kernel path)
# ----------------------------------------------------------------------------
def _reference_forward(model, x):
    B, C, H, W = x.shape
    F = model.feat
    w_oihw = jnp.transpose(model.wc, (2, 1, 0)).reshape(F, C, KSIZE, KSIZE)
    y = jax.lax.conv_general_dilated(
        x.astype(jnp.bfloat16), w_oihw.astype(jnp.bfloat16),
        window_strides=(1, 1), padding=((1, 1), (1, 1)),
        dimension_numbers=('NCHW', 'OIHW', 'NCHW'),
        preferred_element_type=jnp.float32)
    y = jnp.maximum(y + model.bc.reshape(1, F, 1, 1), 0.0)
    feat = jnp.mean(y, axis=(2, 3))                                      # (B, F)
    return (jnp.dot(feat.astype(jnp.bfloat16), model.wd.astype(jnp.bfloat16),
                    preferred_element_type=jnp.float32) + model.bd)      # (B, L)


def _reference_loss(logits, labels, num_classes, smoothing):
    logp = jax.nn.log_softmax(logits, axis=-1)
    conf = 1.0 - smoothing
    off = smoothing / (num_classes - 1)
    td = jnp.full(logits.shape, off, jnp.float32)
    td = td.at[jnp.arange(logits.shape[0]), labels].set(conf)
    return jnp.mean(jnp.sum(-td * logp, axis=-1))


if __name__ == "__main__":
    key = jax.random.PRNGKey(0)
    k_img, k_lbl, k_par = jax.random.split(key, 3)

    B, C, H, W = 2, 4, 16, 16
    LABELS = 8
    SMOOTHING = 0.1

    input_image = jax.random.normal(k_img, (B, C, H, W), jnp.float32)
    image_label = jax.random.randint(k_lbl, (B,), 0, LABELS, jnp.int32)

    model = ImageModelPallas(in_ch=C, feat=128, label_num=LABELS,
                             smoothing=SMOOTHING, key=k_par)

    # full (loss) path
    loss, pred, logits = model.compute_loss(input_image, image_label)
    jax.block_until_ready((loss, pred, logits))

    # logits-only inference path
    pred2, logits2 = model.predict(input_image)
    fwd_logits = model.forward(input_image)
    jax.block_until_ready((pred2, logits2, fwd_logits))

    # sanity checks against pure-JAX references of the same (bf16-matmul) computation
    ref_logits = _reference_forward(model, input_image)
    assert jnp.allclose(logits, ref_logits, atol=1e-2, rtol=1e-2), "forward mismatch"
    ref_loss = _reference_loss(logits, image_label, LABELS, SMOOTHING)
    assert abs(float(loss) - float(ref_loss)) < 2e-3, "loss mismatch"
    assert jnp.array_equal(pred, jnp.argmax(logits, axis=-1)), "argmax mismatch"
    assert jnp.allclose(logits2, logits, atol=1e-5, rtol=1e-5), "predict/compute_loss logits mismatch"
    assert jnp.allclose(fwd_logits, logits, atol=1e-5, rtol=1e-5), "forward/compute_loss logits mismatch"
    assert jnp.array_equal(pred2, pred), "predict argmax mismatch"
    assert jnp.isfinite(loss), "loss is not finite"

    print("KERNEL_OK")
</pallas_src>

<mosaic_0001>
module attributes {stable_mosaic.version = 11 : i64} {
  func.func @_fused_kernel(%arg0: i32, %arg1: memref<512x48xbf16, #tpu.memory_space<vmem>>, %arg2: memref<2x128xi32, #tpu.memory_space<vmem>>, %arg3: memref<2x512xf32, #tpu.memory_space<vmem>>, %arg4: memref<48x128xbf16, #tpu.memory_space<vmem>>, %arg5: memref<1x128xf32, #tpu.memory_space<vmem>>, %arg6: memref<128x128xbf16, #tpu.memory_space<vmem>>, %arg7: memref<1x128xf32, #tpu.memory_space<vmem>>, %arg8: memref<2x128xf32, #tpu.memory_space<vmem>>, %arg9: memref<2x128xi32, #tpu.memory_space<vmem>>, %arg10: memref<2x128xf32, #tpu.memory_space<vmem>>) attributes {dimension_semantics = [#tpu.dimension_semantics<parallel>], iteration_bounds = array<i64: 1>, scalar_prefetch = 0 : i64, scratch_operands = 0 : i64, tpu.core_type = #tpu.core_type<tc>, window_params = [{transform_indices = @transform_0, window_bounds = array<i64: 512, 48>}, {transform_indices = @transform_1, window_bounds = array<i64: 2, 128>}, {pipeline_mode = #tpu.pipeline_mode<synchronous>, transform_indices = @transform_2, window_bounds = array<i64: 2, 512>}, {pipeline_mode = #tpu.pipeline_mode<synchronous>, transform_indices = @transform_3, window_bounds = array<i64: 48, 128>}, {pipeline_mode = #tpu.pipeline_mode<synchronous>, transform_indices = @transform_4, window_bounds = array<i64: 1, 128>}, {pipeline_mode = #tpu.pipeline_mode<synchronous>, transform_indices = @transform_5, window_bounds = array<i64: 128, 128>}, {pipeline_mode = #tpu.pipeline_mode<synchronous>, transform_indices = @transform_6, window_bounds = array<i64: 1, 128>}, {transform_indices = @transform_7, window_bounds = array<i64: 2, 128>}, {transform_indices = @transform_8, window_bounds = array<i64: 2, 128>}, {transform_indices = @transform_9, window_bounds = array<i64: 2, 128>}]} {
    %c0 = arith.constant 0 : index
    %c0_0 = arith.constant 0 : index
    %0 = vector.load %arg1[%c0, %c0_0] : memref<512x48xbf16, #tpu.memory_space<vmem>>, vector<512x48xbf16>
    %c0_1 = arith.constant 0 : index
    %c0_2 = arith.constant 0 : index
    %1 = vector.load %arg4[%c0_1, %c0_2] : memref<48x128xbf16, #tpu.memory_space<vmem>>, vector<48x128xbf16>
    %cst = arith.constant dense<0.000000e+00> : vector<512x128xf32>
    %2 = tpu.matmul %0, %1, %cst {dimension_numbers = #tpu.dot_dimension_numbers<[1], [0], [0], [1], [0, 0, 1, 1], [], []>} : vector<512x48xbf16>, vector<48x128xbf16>, vector<512x128xf32> -> vector<512x128xf32>
    %c0_3 = arith.constant 0 : index
    %c0_4 = arith.constant 0 : index
    %3 = vector.load %arg5[%c0_3, %c0_4] : memref<1x128xf32, #tpu.memory_space<vmem>>, vector<1x128xf32>
    %4 = vector.broadcast %3 : vector<1x128xf32> to vector<512x128xf32>
    %5 = arith.addf %2, %4 : vector<512x128xf32>
    %cst_5 = arith.constant 0.000000e+00 : f32
    %6 = vector.broadcast %cst_5 : f32 to vector<512x128xf32>
    %7 = arith.maximumf %5, %6 : vector<512x128xf32>
    %c0_6 = arith.constant 0 : index
    %c0_7 = arith.constant 0 : index
    %8 = vector.load %arg3[%c0_6, %c0_7] : memref<2x512xf32, #tpu.memory_space<vmem>>, vector<2x512xf32>
    %cst_8 = arith.constant dense<0.000000e+00> : vector<2x128xf32>
    %9 = tpu.matmul %8, %7, %cst_8 {dimension_numbers = #tpu.dot_dimension_numbers<[1], [0], [0], [1], [0, 0, 1, 1], [], []>} : vector<2x512xf32>, vector<512x128xf32>, vector<2x128xf32> -> vector<2x128xf32>
    %10 = arith.truncf %9 : vector<2x128xf32> to vector<2x128xbf16>
    %c0_9 = arith.constant 0 : index
    %c0_10 = arith.constant 0 : index
    %11 = vector.load %arg6[%c0_9, %c0_10] : memref<128x128xbf16, #tpu.memory_space<vmem>>, vector<128x128xbf16>
    %cst_11 = arith.constant dense<0.000000e+00> : vector<2x128xf32>
    %12 = tpu.matmul %10, %11, %cst_11 {dimension_numbers = #tpu.dot_dimension_numbers<[1], [0], [0], [1], [0, 0, 1, 1], [], []>} : vector<2x128xbf16>, vector<128x128xbf16>, vector<2x128xf32> -> vector<2x128xf32>
    %c0_12 = arith.constant 0 : index
    %c0_13 = arith.constant 0 : index
    %13 = vector.load %arg7[%c0_12, %c0_13] : memref<1x128xf32, #tpu.memory_space<vmem>>, vector<1x128xf32>
    %14 = vector.broadcast %13 : vector<1x128xf32> to vector<2x128xf32>
    %15 = arith.addf %12, %14 : vector<2x128xf32>
    %c0_14 = arith.constant 0 : index
    %c0_15 = arith.constant 0 : index
    %16 = vector.load %arg8[%c0_14, %c0_15] : memref<2x128xf32, #tpu.memory_space<vmem>>, vector<2x128xf32>
    tpu.vector_store %arg8[%c0_14, %c0_15], %15 {strides = array<i32>} : memref<2x128xf32, #tpu.memory_space<vmem>>, vector<2x128xf32>,
    %17 = tpu.iota {dimensions = array<i32: 1>} : vector<2x128xi32>
    %c8_i32 = arith.constant 8 : i32
    %18 = vector.broadcast %c8_i32 : i32 to vector<2x128xi32>
    %19 = arith.cmpi slt, %17, %18 : vector<2x128xi32>
    %cst_16 = arith.constant -1.000000e+30 : f32
    %20 = vector.broadcast %cst_16 : f32 to vector<2x128xf32>
    %21 = arith.select %19, %15, %20 : vector<2x128xi1>, vector<2x128xf32>
    %cst_17 = arith.constant dense<0xFF800000> : vector<2xf32>
    %22 = vector.multi_reduction <maximumf>, %21, %cst_17 [1] : vector<2x128xf32> to vector<2xf32>
    %23 = vector.shape_cast %22 : vector<2xf32> to vector<2x1xf32>
    %24 = vector.broadcast %23 : vector<2x1xf32> to vector<2x128xf32>
    %25 = arith.cmpf oge, %21, %24 : vector<2x128xf32>
    %c128_i32 = arith.constant 128 : i32
    %26 = vector.broadcast %c128_i32 : i32 to vector<2x128xi32>
    %27 = arith.select %25, %17, %26 : vector<2x128xi1>, vector<2x128xi32>
    %cst_18 = arith.constant dense<2147483647> : vector<2xi32>
    %28 = vector.multi_reduction <minsi>, %27, %cst_18 [1] : vector<2x128xi32> to vector<2xi32>
    %29 = vector.shape_cast %28 : vector<2xi32> to vector<2x1xi32>
    %30 = vector.shape_cast %29 : vector<2x1xi32> to vector<2x1xi32>
    %31 = vector.broadcast %30 : vector<2x1xi32> to vector<2x128xi32>
    %c0_19 = arith.constant 0 : index
    %c0_20 = arith.constant 0 : index
    %32 = vector.load %arg9[%c0_19, %c0_20] : memref<2x128xi32, #tpu.memory_space<vmem>>, vector<2x128xi32>
    tpu.vector_store %arg9[%c0_19, %c0_20], %31 {strides = array<i32>} : memref<2x128xi32, #tpu.memory_space<vmem>>, vector<2x128xi32>,
    %33 = vector.broadcast %23 : vector<2x1xf32> to vector<2x128xf32>
    %34 = arith.subf %21, %33 : vector<2x128xf32>
    %35 = math.exp %34 : vector<2x128xf32>
    %cst_21 = arith.constant dense<0.000000e+00> : vector<2xf32>
    %36 = vector.multi_reduction <add>, %35, %cst_21 [1] : vector<2x128xf32> to vector<2xf32>
    %37 = vector.shape_cast %36 : vector<2xf32> to vector<2x1xf32>
    %38 = math.log %37 : vector<2x1xf32>
    %39 = arith.addf %38, %23 : vector<2x1xf32>
    %40 = vector.broadcast %39 : vector<2x1xf32> to vector<2x128xf32>
    %41 = arith.subf %21, %40 : vector<2x128xf32>
    %c0_22 = arith.constant 0 : index
    %c0_23 = arith.constant 0 : index
    %42 = vector.load %arg2[%c0_22, %c0_23] : memref<2x128xi32, #tpu.memory_space<vmem>>, vector<2x128xi32>
    %43 = arith.cmpi eq, %17, %42 : vector<2x128xi32>
    %cst_24 = arith.constant 0.0142857144 : f32
    %cst_25 = arith.constant 0.000000e+00 : f32
    %44 = vector.broadcast %cst_24 : f32 to vector<2x128xf32>
    %45 = vector.broadcast %cst_25 : f32 to vector<2x128xf32>
    %46 = arith.select %19, %44, %45 : vector<2x128xi1>, vector<2x128xf32>
    %cst_26 = arith.constant 0.899999976 : f32
    %47 = vector.broadcast %cst_26 : f32 to vector<2x128xf32>
    %48 = arith.select %43, %47, %46 : vector<2x128xi1>, vector<2x128xf32>
    %cst_27 = arith.constant 0.000000e+00 : f32
    %49 = vector.broadcast %cst_27 : f32 to vector<2x128xf32>
    %50 = arith.subf %49, %48 : vector<2x128xf32>
    %51 = arith.mulf %50, %41 : vector<2x128xf32>
    %cst_28 = arith.constant dense<0.000000e+00> : vector<2xf32>
    %52 = vector.multi_reduction <add>, %51, %cst_28 [1] : vector<2x128xf32> to vector<2xf32>
    %53 = vector.shape_cast %52 : vector<2xf32> to vector<2x1xf32>
    %54 = vector.shape_cast %53 : vector<2x1xf32> to vector<2x1xf32>
    %55 = vector.broadcast %54 : vector<2x1xf32> to vector<2x128xf32>
    %c0_29 = arith.constant 0 : index
    %c0_30 = arith.constant 0 : index
    %56 = vector.load %arg10[%c0_29, %c0_30] : memref<2x128xf32, #tpu.memory_space<vmem>>, vector<2x128xf32>
    tpu.vector_store %arg10[%c0_29, %c0_30], %55 {strides = array<i32>} : memref<2x128xf32, #tpu.memory_space<vmem>>, vector<2x128xf32>,
    return
  }
  func.func @transform_0(%arg0: i32) -> (i32, i32) {
    %c0_i32 = arith.constant 0 : i32
    %c0_i32_0 = arith.constant 0 : i32
    return %arg0, %c0_i32 : i32, i32
  }
  func.func @transform_1(%arg0: i32) -> (i32, i32) {
    %c0_i32 = arith.constant 0 : i32
    %c0_i32_0 = arith.constant 0 : i32
    return %arg0, %c0_i32 : i32, i32
  }
  func.func @transform_2(%arg0: i32) -> (i32, i32) {
    %c0_i32 = arith.constant 0 : i32
    %c0_i32_0 = arith.constant 0 : i32
    %c0_i32_1 = arith.constant 0 : i32
    return %c0_i32, %c0_i32_0 : i32, i32
  }
  func.func @transform_3(%arg0: i32) -> (i32, i32) {
    %c0_i32 = arith.constant 0 : i32
    %c0_i32_0 = arith.constant 0 : i32
    %c0_i32_1 = arith.constant 0 : i32
    return %c0_i32, %c0_i32_0 : i32, i32
  }
  func.func @transform_4(%arg0: i32) -> (i32, i32) {
    %c0_i32 = arith.constant 0 : i32
    %c0_i32_0 = arith.constant 0 : i32
    %c0_i32_1 = arith.constant 0 : i32
    return %c0_i32, %c0_i32_0 : i32, i32
  }
  func.func @transform_5(%arg0: i32) -> (i32, i32) {
    %c0_i32 = arith.constant 0 : i32
    %c0_i32_0 = arith.constant 0 : i32
    %c0_i32_1 = arith.constant 0 : i32
    return %c0_i32, %c0_i32_0 : i32, i32
  }
  func.func @transform_6(%arg0: i32) -> (i32, i32) {
    %c0_i32 = arith.constant 0 : i32
    %c0_i32_0 = arith.constant 0 : i32
    %c0_i32_1 = arith.constant 0 : i32
    return %c0_i32, %c0_i32_0 : i32, i32
  }
  func.func @transform_7(%arg0: i32) -> (i32, i32) {
    %c0_i32 = arith.constant 0 : i32
    %c0_i32_0 = arith.constant 0 : i32
    return %arg0, %c0_i32 : i32, i32
  }
  func.func @transform_8(%arg0: i32) -> (i32, i32) {
    %c0_i32 = arith.constant 0 : i32
    %c0_i32_0 = arith.constant 0 : i32
    return %arg0, %c0_i32 : i32, i32
  }
  func.func @transform_9(%arg0: i32) -> (i32, i32) {
    %c0_i32 = arith.constant 0 : i32
    %c0_i32_0 = arith.constant 0 : i32
    return %arg0, %c0_i32 : i32, i32
  }
}

</mosaic_0001>

<bundles_post_ra>
// kernel: tpu_custom_call.1
= control target key start
LH: loop header
LB: loop body
LE: loop exit
PB: predicated region body
PF: predicated region fallthrough
CT: control target
= control target key end

     0   :  { %15 = vsyncpa [#allocation3], 0  ;;  %s1615_s0 = inlined_call_operand.vmem [shape: bf16[512,48], index: 0, kind: input, shape index: {}]   ;;  %s1616_s1 = inlined_call_operand.vmem [shape: s32[2,128], index: 1, kind: input, shape index: {}]   ;;  %s1617_s2 = inlined_call_operand.vmem [shape: f32[2,512], index: 2, kind: input, shape index: {}]   ;;  %s1618_s3 = inlined_call_operand.vmem [shape: bf16[48,128], index: 3, kind: input, shape index: {}]   ;;  %s1619_s4 = inlined_call_operand.vmem [shape: f32[1,128], index: 4, kind: input, shape index: {}]   ;;  %s1620_s5 = inlined_call_operand.vmem [shape: bf16[128,128], index: 5, kind: input, shape index: {}]   ;;  %s1621_s6 = inlined_call_operand.vmem [shape: f32[1,128], index: 6, kind: input, shape index: {}]   ;;  %s1622_s7 = inlined_call_operand.hbm [shape: f32[2,128], index: 7, kind: output, shape index: {0}]   ;;  %s1623_s8 = inlined_call_operand.hbm [shape: s32[2,128], index: 8, kind: output, shape index: {1}]   ;;  %s1624_s9 = inlined_call_operand.hbm [shape: f32[2,128], index: 9, kind: output, shape index: {2}]  }
   0x1   :  { %v1119_v0 = vld [vmem:[%s1618_s3 + $0x10] sm:$0xff]  ;;  %v1118_v1 = vld [vmem:[%s1618_s3 + $0x8] sm:$0xff] }
   0x2   :  { %386 = vmatpush.bf16.msra.mxu0 %v1119_v0  ;;  %1128 = vmatpush.bf16.msra.mxu1 %v1119_v0 }
   0x3   :  { %1129 = vmatpush.bf16.msra.mxu2 %v1119_v0  ;;  %1130 = vmatpush.bf16.msra.mxu3 %v1119_v0 }
   0x4   :  { %16 = vsyncpa [#allocation5], 0  ;;  %v1117_v2 = vld [vmem:[%s1618_s3] sm:$0xff]  ;;  %v1096_v4 = vld [vmem:[%s1615_s0 + $0x58] sm:$0xff]  ;;  %vm284_vm0 = vcmask 392192   ;;  %vm792_vm2 = vcmask 1041408  }
   0x5   :  { %v1085_v3 = vld [vmem:[%s1615_s0] sm:$0xff]  ;;  %v1103_v5 = vld [vmem:[%s1615_s0 + $0x90] sm:$0xff]  ;;  %v1086_v7 = vld [vmem:[%s1615_s0 + $0x8] sm:$0xff]  ;;  %s841_s12 = sshll.u32 %s1622_s7, 4  ;;  %s1224_s13 = smov [#allocation2]   ;;  %s842_s12 = int_to_ptr.hbm [resolvable:$true] %s841_s12 }
   0x6   :  { %387 = vmatpush.bf16.msra.mxu0 %v1118_v1  ;;  %1131 = vmatpush.bf16.msra.mxu1 %v1118_v1  ;;  %v1107_v6 = vld [vmem:[%s1615_s0 + $0xb0] sm:$0xff]  ;;  %v1097_v8 = vld [vmem:[%s1615_s0 + $0x60] sm:$0xff]  ;;  %v1104_v9 = vld [vmem:[%s1615_s0 + $0x98] sm:$0xff]  ;;  %s839_s14 = sshll.u32 %s1224_s13, 4  ;;  %s1226_s15 = smov [#allocation6]   ;;  %s840_s14 = int_to_ptr.vmem [resolvable:$true] %s839_s14 }
   0x7   :  { %1132 = vmatpush.bf16.msra.mxu2 %v1118_v1  ;;  %1133 = vmatpush.bf16.msra.mxu3 %v1118_v1  ;;  %v1108_v10 = vld [vmem:[%s1615_s0 + $0xb8] sm:$0xff]  ;;  %v1087_v11 = vld [vmem:[%s1615_s0 + $0x10] sm:$0xff]  ;;  %v1098_v12 = vld [vmem:[%s1615_s0 + $0x68] sm:$0xff]  ;;  %s861_s16 = sshll.u32 %s1226_s15, 4  ;;  %s863_s19 = sshll.u32 %s1624_s9, 4  ;;  %s862_s16 = int_to_ptr.vmem [resolvable:$true] %s861_s16  ;;  %s864_s19 = int_to_ptr.hbm [resolvable:$true] %s863_s19 }
   0x8   :  { %v1105_v13 = vld [vmem:[%s1615_s0 + $0xa0] sm:$0xff]  ;;  %v1088_v15 = vld [vmem:[%s1615_s0 + $0x18] sm:$0xff]  ;;  %v1099_v16 = vld [vmem:[%s1615_s0 + $0x70] sm:$0xff] }
   0x9   :  { %v1109_v14 = vld [vmem:[%s1615_s0 + $0xc0] sm:$0xff]  ;;  %v1106_v17 = vld [vmem:[%s1615_s0 + $0xa8] sm:$0xff]  ;;  %v1100_v20 = vld [vmem:[%s1615_s0 + $0x78] sm:$0xff] }
   0xa   :  { %388 = vmatpush.bf16.msra.mxu0 %v1117_v2  ;;  %1134 = vmatpush.bf16.msra.mxu1 %v1117_v2  ;;  %v1110_v18 = vld [vmem:[%s1615_s0 + $0xc8] sm:$0xff]  ;;  %v1089_v19 = vld [vmem:[%s1615_s0 + $0x20] sm:$0xff]  ;;  %v1111_v21 = vld [vmem:[%s1615_s0 + $0xd0] sm:$0xff] }
   0xb   :  { %1135 = vmatpush.bf16.msra.mxu2 %v1117_v2  ;;  %1136 = vmatpush.bf16.msra.mxu3 %v1117_v2  ;;  %v1090_v22 = vld [vmem:[%s1615_s0 + $0x28] sm:$0xff]  ;;  %v1112_v23 = vld [vmem:[%s1615_s0 + $0xd8] sm:$0xff]  ;;  %v1101_v24 = vld [vmem:[%s1615_s0 + $0x80] sm:$0xff] }
   0xc   :  { %v1091_v25 = vld [vmem:[%s1615_s0 + $0x30] sm:$0xff]  ;;  %v1113_v26 = vld [vmem:[%s1615_s0 + $0xe0] sm:$0xff]  ;;  %v1102_v27 = vld [vmem:[%s1615_s0 + $0x88] sm:$0xff] }
   0xd   :  { %1021 = vmatmul.msk.bf16.vlgmr.msra.gmra.mxu0 %vm284_vm0, %v1085_v3  ;;  %1032 = vmatmul.msk.bf16.vlgmr.msra.gmra.mxu1 %vm284_vm0, %v1096_v4  ;;  %v1092_v28 = vld [vmem:[%s1615_s0 + $0x38] sm:$0xff]  ;;  %v1114_v29 = vld [vmem:[%s1615_s0 + $0xe8] sm:$0xff]  ;;  %v1093_v30 = vld [vmem:[%s1615_s0 + $0x40] sm:$0xff] }
   0xe   :  { %1039 = vmatmul.msk.bf16.vlgmr.msra.gmra.mxu2 %vm284_vm0, %v1103_v5  ;;  %1043 = vmatmul.msk.bf16.vlgmr.msra.gmra.mxu3 %vm284_vm0, %v1107_v6  ;;  %v1115_v33 = vld [vmem:[%s1615_s0 + $0xf0] sm:$0xff]  ;;  %v1094_v40 = vld [vmem:[%s1615_s0 + $0x48] sm:$0xff]  ;;  %v1116_v43 = vld [vmem:[%s1615_s0 + $0xf8] sm:$0xff] }
   0xf   :  { %v1431_v48 = vld [vmem:[%s1619_s4] ss:$0 sm:$0xff]  ;;  %v1095_v51 = vld [vmem:[%s1615_s0 + $0x50] sm:$0xff] }
  0x1d   :  { %1022 = vmatmul.msk.bf16.gmra.mxu0 %vm284_vm0, %v1086_v7  ;;  %1033 = vmatmul.msk.bf16.gmra.mxu1 %vm284_vm0, %v1097_v8 }
  0x1e   :  { %1040 = vmatmul.msk.bf16.gmra.mxu2 %vm284_vm0, %v1104_v9  ;;  %1044 = vmatmul.msk.bf16.gmra.mxu3 %vm284_vm0, %v1108_v10 }
  0x2d   :  { %1023 = vmatmul.msk.bf16.gmra.mxu0 %vm284_vm0, %v1087_v11  ;;  %1034 = vmatmul.msk.bf16.gmra.mxu1 %vm284_vm0, %v1098_v12 }
  0x2e   :  { %1041 = vmatmul.msk.bf16.gmra.mxu2 %vm284_vm0, %v1105_v13  ;;  %1045 = vmatmul.msk.bf16.gmra.mxu3 %vm284_vm0, %v1109_v14 }
  0x3d   :  { %1024 = vmatmul.msk.bf16.gmra.mxu0 %vm284_vm0, %v1088_v15  ;;  %1035 = vmatmul.msk.bf16.gmra.mxu1 %vm284_vm0, %v1099_v16 }
  0x3e   :  { %1042 = vmatmul.msk.bf16.gmra.mxu2 %vm284_vm0, %v1106_v17  ;;  %1046 = vmatmul.msk.bf16.gmra.mxu3 %vm284_vm0, %v1110_v18 }
  0x4d   :  { %1025 = vmatmul.msk.bf16.gmra.mxu0 %vm284_vm0, %v1089_v19  ;;  %1036 = vmatmul.msk.bf16.gmra.mxu1 %vm284_vm0, %v1100_v20 }
  0x4e   :  { %1047 = vmatmul.msk.bf16.gmra.mxu3 %vm284_vm0, %v1111_v21 }
  0x5d   :  { %1026 = vmatmul.msk.bf16.gmra.mxu0 %vm284_vm0, %v1090_v22  ;;  %1037 = vmatmul.msk.bf16.gmra.mxu1 %vm284_vm0, %v1101_v24 }
  0x5e   :  { %1048 = vmatmul.msk.bf16.gmra.mxu3 %vm284_vm0, %v1112_v23 }
  0x6d   :  { %1027 = vmatmul.msk.bf16.gmra.mxu0 %vm284_vm0, %v1091_v25  ;;  %1038 = vmatmul.msk.bf16.gmra.mxu1 %vm284_vm0, %v1102_v27 }
  0x6e   :  { %1049 = vmatmul.msk.bf16.gmra.mxu3 %vm284_vm0, %v1113_v26 }
  0x7d   :  { %1028 = vmatmul.msk.bf16.gmra.mxu0 %vm284_vm0, %v1092_v28 }
  0x7e   :  { %1050 = vmatmul.msk.bf16.gmra.mxu3 %vm284_vm0, %v1114_v29 }
  0x8a   :  { %v1397_v31 = vpop.f32.mrf.mxu0  ;;  %v1399_v32 = vpop.f32.mrf.mxu1 }
  0x8d   :  { %1029 = vmatmul.msk.bf16.gmra.mxu0 %vm284_vm0, %v1093_v30 }
  0x8e   :  { %1051 = vmatmul.msk.bf16.gmra.mxu3 %vm284_vm0, %v1115_v33 }
  0x91   :  { %v1406_v34 = vpop.f32.mrf.mxu2  ;;  %v500_v35 = vpop.f32.mrf.mxu3 }
  0x92   :  { %v1408_v36 = vpop.f32.mrf.mxu0  ;;  %v1410_v37 = vpop.f32.mrf.mxu1  ;;  %v501_v58 = vadd.f32 %v1431_v48, %v500_v35  ;;  %v481_v35 = vadd.f32 %v1431_v48, %v1406_v34 }
  0x94   :  { %v594_v63 = vmax.f32 %v501_v58, 0.0 }
  0x99   :  { %v482_v38 = vpop.f32.mrf.mxu2  ;;  %v502_v39 = vpop.f32.mrf.mxu3 }
  0x9a   :  { %v1415_v41 = vpop.f32.mrf.mxu0  ;;  %v1417_v42 = vpop.f32.mrf.mxu1  ;;  %v503_v56 = vadd.f32 %v1431_v48, %v502_v39  ;;  %v483_v26 = vadd.f32 %v1431_v48, %v482_v38 }
  0x9b   :  { %v451_v58 = vadd.f32 %v1431_v48, %v1417_v42 }
  0x9c   :  { %v595_v60 = vmax.f32 %v503_v56, 0.0 }
  0x9d   :  { %1030 = vmatmul.msk.bf16.gmra.mxu0 %vm284_vm0, %v1094_v40 }
  0x9e   :  { %1052 = vmatmul.msk.bf16.gmra.mxu3 %vm284_vm0, %v1116_v43 }
  0xa1   :  { %v485_v44 = vpop.f32.mrf.mxu2  ;;  %v505_v45 = vpop.f32.mrf.mxu3 }
  0xa2   :  { %v1424_v46 = vpop.f32.mrf.mxu0  ;;  %v1426_v47 = vpop.f32.mrf.mxu1  ;;  %v506_v52 = vadd.f32 %v1431_v48, %v505_v45  ;;  %v486_v22 = vadd.f32 %v1431_v48, %v485_v44  ;;  %v587_v45 = vmax.f32 %v483_v26, 0.0 }
  0xa3   :  { %v453_v56 = vadd.f32 %v1431_v48, %v1426_v47  ;;  %v446_v47 = vadd.f32 %v1431_v48, %v1399_v32 }
  0xa4   :  { %v596_v59 = vmax.f32 %v506_v52, 0.0  ;;  %v588_v39 = vmax.f32 %v486_v22, 0.0 }
  0xa5   :  { %v572_v42 = vmax.f32 %v446_v47, 0.0 }
  0xa9   :  { %v487_v49 = vpop.f32.mrf.mxu2  ;;  %v507_v50 = vpop.f32.mrf.mxu3 }
  0xaa   :  { %v508_v53 = vadd.f32 %v1431_v48, %v507_v50  ;;  %v1438_v54 = vpop.f32.mrf.mxu0  ;;  %v455_v55 = vpop.f32.mrf.mxu1  ;;  %v488_v20 = vadd.f32 %v1431_v48, %v487_v49  ;;  %v586_v50 = vmax.f32 %v481_v35, 0.0 }
  0xac   :  { %v597_v57 = vmax.f32 %v508_v53, 0.0  ;;  %v589_v27 = vmax.f32 %v488_v20, 0.0 }
  0xad   :  { %1031 = vmatmul.msk.bf16.gmra.mxu0 %vm284_vm0, %v1095_v51  ;;  %v456_v51 = vadd.f32 %v1431_v48, %v455_v55  ;;  %v448_v55 = vadd.f32 %v1431_v48, %v1410_v37 }
  0xae   :  { %665 = vmatpush.msrb.mxu3 %v597_v57 }
  0xb0   :  { %666 = vmatpush.msrb.mxu3 %v596_v59  ;;  %v576_v59 = vmax.f32 %v456_v51, 0.0 }
  0xb1   :  { %v490_v61 = vpop.f32.mrf.mxu2  ;;  %v1443_v62 = vpop.f32.mrf.mxu3 }
  0xb2   :  { %v1445_v0 = vpop.f32.mrf.mxu0  ;;  %v457_v1 = vpop.f32.mrf.mxu1  ;;  %667 = vmatpush.msrb.mxu3 %v595_v60  ;;  %v491_v17 = vadd.f32 %v1431_v48, %v490_v61  ;;  %v575_v60 = vmax.f32 %v453_v56, 0.0  ;;  %v574_v61 = vmax.f32 %v451_v58, 0.0 }
  0xb3   :  { %v458_v38 = vadd.f32 %v1431_v48, %v457_v1 }
  0xb4   :  { %668 = vmatpush.msrb.mxu3 %v594_v63  ;;  %v590_v23 = vmax.f32 %v491_v17, 0.0 }
  0xb5   :  { %v577_v57 = vmax.f32 %v458_v38, 0.0 }
  0xb9   :  { %v492_v2 = vpop.f32.mrf.mxu2  ;;  %v1447_v3 = vpop.f32.mrf.mxu3 }
  0xba   :  { %v1449_v4 = vpop.f32.mrf.mxu0  ;;  %v460_v5 = vpop.f32.mrf.mxu1  ;;  %v493_v13 = vadd.f32 %v1431_v48, %v492_v2 }
  0xbb   :  { %v461_v40 = vadd.f32 %v1431_v48, %v460_v5  ;;  %v573_v5 = vmax.f32 %v448_v55, 0.0 }
  0xbc   :  { %v591_v21 = vmax.f32 %v493_v13, 0.0 }
  0xbd   :  { %v578_v52 = vmax.f32 %v461_v40, 0.0 }
  0xc1   :  { %v495_v6 = vpop.f32.mrf.mxu2  ;;  %v1451_v7 = vpop.f32.mrf.mxu3 }
  0xc2   :  { %v1453_v8 = vpop.f32.mrf.mxu0  ;;  %v462_v9 = vpop.f32.mrf.mxu1  ;;  %v496_v10 = vadd.f32 %v1431_v48, %v495_v6 }
  0xc3   :  { %v463_v30 = vadd.f32 %v1431_v48, %v462_v9  ;;  %v408_v58 = vadd.f32 %v1431_v48, %v1453_v8  ;;  %v398_v8 = vadd.f32 %v1431_v48, %v1424_v46  ;;  %v391_v46 = vadd.f32 %v1431_v48, %v1397_v31 }
  0xc4   :  { %v592_v18 = vmax.f32 %v496_v10, 0.0 }
  0xc5   :  { %v579_v49 = vmax.f32 %v463_v30, 0.0 }
  0xc9   :  { %v497_v11 = vpop.f32.mrf.mxu2  ;;  %v1456_v12 = vpop.f32.mrf.mxu3 }
  0xca   :  { %v498_v14 = vadd.f32 %v1431_v48, %v497_v11  ;;  %v1460_v15 = vpop.f32.mrf.mxu0  ;;  %v465_v16 = vpop.f32.mrf.mxu1 }
  0xcb   :  { %v466_v24 = vadd.f32 %v1431_v48, %v465_v16  ;;  %v411_v56 = vadd.f32 %v1431_v48, %v1460_v15  ;;  %v401_v15 = vadd.f32 %v1431_v48, %v1438_v54  ;;  %v393_v54 = vadd.f32 %v1431_v48, %v1408_v36 }
  0xcc   :  { %v593_v19 = vmax.f32 %v498_v14, 0.0 }
  0xcd   :  { %v580_v43 = vmax.f32 %v466_v24, 0.0 }
  0xce   :  { %669 = vmatpush.msrb.mxu3 %v593_v19 }
  0xd0   :  { %670 = vmatpush.msrb.mxu3 %v592_v18 }
  0xd1   :  { %v1466_v25 = vpop.f32.mrf.mxu3 }
  0xd2   :  { %671 = vmatpush.msrb.mxu3 %v591_v21  ;;  %v1469_v28 = vpop.f32.mrf.mxu0  ;;  %v467_v29 = vpop.f32.mrf.mxu1 }
  0xd3   :  { %v468_v33 = vadd.f32 %v1431_v48, %v467_v29  ;;  %v413_v51 = vadd.f32 %v1431_v48, %v1469_v28  ;;  %v403_v28 = vadd.f32 %v1431_v48, %v1445_v0  ;;  %v396_v0 = vadd.f32 %v1431_v48, %v1415_v41 }
  0xd4   :  { %672 = vmatpush.msrb.mxu3 %v590_v23 }
  0xd5   :  { %v581_v44 = vmax.f32 %v468_v33, 0.0 }
  0xd6   :  { %673 = vmatpush.msrb.mxu3 %v589_v27 }
  0xd7   :  { %645 = vmatpush.msrb.mxu2 %v581_v44 }
  0xd8   :  { %674 = vmatpush.msrb.mxu3 %v588_v39 }
  0xd9   :  { %v1478_v53 = vpop.f32.mrf.mxu3  ;;  %646 = vmatpush.msrb.mxu2 %v580_v43 }
  0xda   :  { %675 = vmatpush.msrb.mxu3 %v587_v45  ;;  %v415_v34 = vpop.f32.mrf.mxu0  ;;  %v470_v2 = vpop.f32.mrf.mxu1 }
  0xdb   :  { %647 = vmatpush.msrb.mxu2 %v579_v49  ;;  %v471_v19 = vadd.f32 %v1431_v48, %v470_v2  ;;  %v416_v49 = vadd.f32 %v1431_v48, %v415_v34  ;;  %v406_v34 = vadd.f32 %v1431_v48, %v1449_v4  ;;  %v555_v2 = vmax.f32 %v403_v28, 0.0  ;;  %v614_v4 = vld [vmem:[%s1617_s2] sm:$0xff]  ;;  %s852_s2 = sshll.u32 %s1623_s8, 4  ;;  %s853_s2 = int_to_ptr.hbm [resolvable:$true] %s852_s2 }
  0xdc   :  { %676 = vmatpush.msrb.mxu3 %v586_v50  ;;  %616 = vst [vmem:[#allocation1] ss:$4 sm:$0xff] %v614_v4 }
  0xdd   :  { %648 = vmatpush.msrb.mxu2 %v578_v52  ;;  %v582_v27 = vmax.f32 %v471_v19, 0.0  ;;  %v556_v47 = vmax.f32 %v406_v34, 0.0 }
  0xdf   :  { %649 = vmatpush.msrb.mxu2 %v577_v57  ;;  %v560_v57 = vmax.f32 %v416_v49, 0.0 }
  0xe1   :  { %v1486_v63 = vpop.f32.mrf.mxu3  ;;  %650 = vmatpush.msrb.mxu2 %v576_v59  ;;  %v559_v59 = vmax.f32 %v413_v51, 0.0 }
  0xe2   :  { %v417_v1 = vpop.f32.mrf.mxu0  ;;  %v472_v10 = vpop.f32.mrf.mxu1 }
  0xe3   :  { %651 = vmatpush.msrb.mxu2 %v575_v60  ;;  %v473_v18 = vadd.f32 %v1431_v48, %v472_v10  ;;  %v418_v43 = vadd.f32 %v1431_v48, %v417_v1  ;;  %v557_v1 = vmax.f32 %v408_v58, 0.0  ;;  %v553_v10 = vmax.f32 %v398_v8, 0.0  ;;  %v617_v41 = vld.sshfl [vmem:[#allocation1] sm:$0xff pattern:$0x73625140] }
  0xe4   :  { %v516_v8 = vadd.f32 %v1431_v48, %v1451_v7  ;;  %v1125_v7 = vld [vmem:[%s1620_s5 + $0x28] sm:$0xff] }
  0xe5   :  { %652 = vmatpush.msrb.mxu2 %v574_v61  ;;  %v583_v22 = vmax.f32 %v473_v18, 0.0  ;;  %v561_v52 = vmax.f32 %v418_v43, 0.0  ;;  %v558_v61 = vmax.f32 %v411_v56, 0.0  ;;  %v619_v18 = vld.sshfl [vmem:[#allocation1 + $0x10] sm:$0xff pattern:$0x73625140] }
  0xe6   :  { %v600_v4 = vmax.f32 %v516_v8, 0.0 }
  0xe7   :  { %653 = vmatpush.msrb.mxu2 %v573_v5 }
  0xe9   :  { %v1490_v6 = vpop.f32.mrf.mxu3  ;;  %654 = vmatpush.msrb.mxu2 %v572_v42 }
  0xea   :  { %v420_v9 = vpop.f32.mrf.mxu0  ;;  %v475_v13 = vpop.f32.mrf.mxu1  ;;  %v528_v56 = vadd.f32 %v1431_v48, %v1490_v6  ;;  %v523_v6 = vadd.f32 %v1431_v48, %v1478_v53 }
  0xeb   :  { %v476_v20 = vadd.f32 %v1431_v48, %v475_v13  ;;  %v421_v39 = vadd.f32 %v1431_v48, %v420_v9  ;;  %v554_v9 = vmax.f32 %v401_v15, 0.0  ;;  %v551_v13 = vmax.f32 %v393_v54, 0.0  ;;  %v618_v15 = vld.sshfl [vmem:[#allocation1 + $0x8] sm:$0xff pattern:$0x73625140] }
  0xec   :  { %v603_v53 = vmax.f32 %v523_v6, 0.0  ;;  %v620_v54 = vld.sshfl [vmem:[#allocation1 + $0x18] sm:$0xff pattern:$0x73625140] }
  0xed   :  { %v584_v23 = vmax.f32 %v476_v20, 0.0  ;;  %v562_v50 = vmax.f32 %v421_v39, 0.0 }
  0xf1   :  { %v1492_v37 = vpop.f32.mrf.mxu3 }
  0xf2   :  { %v422_v11 = vpop.f32.mrf.mxu0  ;;  %v477_v17 = vpop.f32.mrf.mxu1 }
  0xf3   :  { %v478_v32 = vadd.f32 %v1431_v48, %v477_v17  ;;  %v423_v33 = vadd.f32 %v1431_v48, %v422_v11  ;;  %v552_v11 = vmax.f32 %v396_v0, 0.0 }
  0xf5   :  { %v585_v21 = vmax.f32 %v478_v32, 0.0  ;;  %v563_v44 = vmax.f32 %v423_v33, 0.0  ;;  %v550_v32 = vmax.f32 %v391_v46, 0.0  ;;  %v1120_v46 = vld [vmem:[%s1620_s5] sm:$0xff] }
  0xf7   :  { %677 = vmatpush.msrb.mxu3 %v585_v21 }
  0xf9   :  { %v1494_v14 = vpop.f32.mrf.mxu3  ;;  %678 = vmatpush.msrb.mxu3 %v584_v23 }
  0xfa   :  { %v425_v16 = vpop.f32.mrf.mxu0  ;;  %v533_v43 = vadd.f32 %v1431_v48, %v1494_v14 }
  0xfb   :  { %v426_v29 = vadd.f32 %v1431_v48, %v425_v16  ;;  %679 = vmatpush.msrb.mxu3 %v583_v22 }
  0xfd   :  { %680 = vmatpush.msrb.mxu3 %v582_v27  ;;  %v564_v40 = vmax.f32 %v426_v29, 0.0 }
  0xfe   :  { %681 = vmatmul.f32.vlgmr.msrb.gmra.mxu3 %v619_v18 }
 0x101   :  { %v1500_v24 = vpop.f32.mrf.mxu3 }
 0x102   :  { %v427_v26 = vpop.f32.mrf.mxu0 }
 0x103   :  { %v428_v30 = vadd.f32 %v1431_v48, %v427_v26 }
 0x105   :  { %v565_v35 = vmax.f32 %v428_v30, 0.0  ;;  %v536_v30 = vadd.f32 %v1431_v48, %v1500_v24 }
 0x107   :  { %625 = vmatpush.msrb.mxu1 %v565_v35  ;;  %v608_v51 = vmax.f32 %v536_v30, 0.0 }
 0x109   :  { %v537_v45 = vpop.f32.mrf.mxu3  ;;  %626 = vmatpush.msrb.mxu1 %v564_v40 }
 0x10a   :  { %v1507_v38 = vpop.f32.mrf.mxu0  ;;  %v538_v27 = vadd.f32 %v1431_v48, %v537_v45 }
 0x10b   :  { %627 = vmatpush.msrb.mxu1 %v563_v44 }
 0x10c   :  { %v609_v44 = vmax.f32 %v538_v27, 0.0 }
 0x10d   :  { %628 = vmatpush.msrb.mxu1 %v562_v50  ;;  %v531_v50 = vadd.f32 %v1431_v48, %v1492_v37 }
 0x10f   :  { %629 = vmatpush.msrb.mxu1 %v561_v52  ;;  %v606_v37 = vmax.f32 %v531_v50, 0.0 }
 0x111   :  { %v540_v60 = vpop.f32.mrf.mxu3  ;;  %630 = vmatpush.msrb.mxu1 %v560_v57  ;;  %v607_v57 = vmax.f32 %v533_v43, 0.0 }
 0x112   :  { %v1516_v55 = vpop.f32.mrf.mxu0  ;;  %v541_v23 = vadd.f32 %v1431_v48, %v540_v60  ;;  %v431_v60 = vadd.f32 %v1431_v48, %v1507_v38  ;;  %v1127_v38 = vld [vmem:[%s1620_s5 + $0x38] sm:$0xff] }
 0x113   :  { %631 = vmatpush.msrb.mxu1 %v559_v59  ;;  %v433_v14 = vadd.f32 %v1431_v48, %v1516_v55  ;;  %v526_v59 = vadd.f32 %v1431_v48, %v1486_v63  ;;  %v521_v55 = vadd.f32 %v1431_v48, %v1466_v25  ;;  %v1126_v25 = vld [vmem:[%s1620_s5 + $0x30] sm:$0xff] }
 0x114   :  { %v610_v33 = vmax.f32 %v541_v23, 0.0  ;;  %v566_v63 = vmax.f32 %v431_v60, 0.0 }
 0x115   :  { %632 = vmatpush.msrb.mxu1 %v558_v61  ;;  %v605_v61 = vmax.f32 %v528_v56, 0.0  ;;  %v567_v28 = vmax.f32 %v433_v14, 0.0  ;;  %v824_v56 = vld [vmem:[%s1616_s1] sm:$0x3]  ;;  %s1225_s1 = smov [#allocation4]  }
 0x116   :  { %s850_s0 = sshll.u32 %s1225_s1, 4  ;;  %s851_s0 = int_to_ptr.vmem [resolvable:$true] %s850_s0 }
 0x117   :  { %633 = vmatpush.msrb.mxu1 %v557_v1  ;;  %v604_v1 = vmax.f32 %v526_v59, 0.0 }
 0x119   :  { %v542_v5 = vpop.f32.mrf.mxu3  ;;  %634 = vmatpush.msrb.mxu1 %v556_v47  ;;  %v518_v47 = vadd.f32 %v1431_v48, %v1456_v12  ;;  %v511_v12 = vadd.f32 %v1431_v48, %v1443_v62  ;;  %v1122_v62 = vld [vmem:[%s1620_s5 + $0x10] sm:$0xff] }
 0x11a   :  { %v435_v42 = vpop.f32.mrf.mxu0  ;;  %v543_v31 = vadd.f32 %v1431_v48, %v542_v5  ;;  %v513_v5 = vadd.f32 %v1431_v48, %v1447_v3  ;;  %v1124_v3 = vld [vmem:[%s1620_s5 + $0x20] sm:$0xff] }
 0x11b   :  { %635 = vmatpush.msrb.mxu1 %v555_v2  ;;  %v436_v24 = vadd.f32 %v1431_v48, %v435_v42  ;;  %v602_v2 = vmax.f32 %v521_v55, 0.0  ;;  %v601_v42 = vmax.f32 %v518_v47, 0.0 }
 0x11c   :  { %v611_v29 = vmax.f32 %v543_v31, 0.0  ;;  %v599_v0 = vmax.f32 %v513_v5, 0.0 }
 0x11d   :  { %636 = vmatpush.msrb.mxu1 %v554_v9  ;;  %v568_v34 = vmax.f32 %v436_v24, 0.0  ;;  %v598_v9 = vmax.f32 %v511_v12, 0.0 }
 0x11f   :  { %637 = vmatpush.msrb.mxu1 %v553_v10  ;;  %v1121_v10 = vld [vmem:[%s1620_s5 + $0x8] sm:$0xff] }
 0x121   :  { %v545_v16 = vpop.f32.mrf.mxu3  ;;  %638 = vmatpush.msrb.mxu1 %v552_v11 }
 0x122   :  { %v437_v17 = vpop.f32.mrf.mxu0  ;;  %v546_v36 = vadd.f32 %v1431_v48, %v545_v16 }
 0x123   :  { %639 = vmatpush.msrb.mxu1 %v551_v13  ;;  %v438_v49 = vadd.f32 %v1431_v48, %v437_v17 }
 0x124   :  { %v612_v26 = vmax.f32 %v546_v36, 0.0  ;;  %v788_v36 = vlaneseq }
 0x125   :  { %640 = vmatpush.msrb.mxu1 %v550_v32  ;;  %v569_v58 = vmax.f32 %v438_v49, 0.0 }
 0x126   :  { %641 = vmatmul.f32.vlgmr.msrb.gmra.mxu1 %v617_v41 }
 0x129   :  { %v547_v19 = vpop.f32.mrf.mxu3 }
 0x12a   :  { %v548_v20 = vadd.f32 %v1431_v48, %v547_v19  ;;  %v440_v21 = vpop.f32.mrf.mxu0 }
 0x12b   :  { %v441_v39 = vadd.f32 %v1431_v48, %v440_v21  ;;  %v1142_v21 = vld [vmem:[%s1621_s6] ss:$0 sm:$0xff] }
 0x12c   :  { %v613_v22 = vmax.f32 %v548_v20, 0.0  ;;  %v789_v20 = vand.u32 127, %v788_v36 }
 0x12d   :  { %v570_v52 = vmax.f32 %v441_v39, 0.0 }
 0x12e   :  { %685 = vmatpush.msra.mxu1 %v613_v22  ;;  %vm790_vm1 = vcmp.lt.s32.totalorder %v789_v20, 8  ;;  %vm825_vm5 = vcmp.eq.s32.totalorder %v789_v20, %v824_v56 }
 0x130   :  { %686 = vmatpush.msra.mxu1 %v612_v26 }
 0x132   :  { %687 = vmatpush.msra.mxu1 %v611_v29  ;;  %v442_v35 = vpop.f32.mrf.mxu0 }
 0x133   :  { %v443_v40 = vadd.f32 %v1431_v48, %v442_v35  ;;  %v1123_v48 = vld [vmem:[%s1620_s5 + $0x18] sm:$0xff] }
 0x134   :  { %688 = vmatpush.msra.mxu1 %v610_v33 }
 0x135   :  { %v571_v45 = vmax.f32 %v443_v40, 0.0 }
 0x136   :  { %689 = vmatpush.msra.mxu1 %v609_v44 }
 0x137   :  { %655 = vmatpush.msrb.mxu2 %v571_v45 }
 0x138   :  { %690 = vmatpush.msra.mxu1 %v608_v51 }
 0x139   :  { %656 = vmatpush.msrb.mxu2 %v570_v52 }
 0x13a   :  { %691 = vmatpush.msra.mxu1 %v607_v57  ;;  %v1223_v57 = vmov 0.0  }
 0x13b   :  { %657 = vmatpush.msrb.mxu2 %v569_v58  ;;  %v826_v14 = vsel %vm790_vm1, 0.014285714, %v1223_v57 }
 0x13c   :  { %692 = vmatpush.msra.mxu1 %v606_v37  ;;  %v827_v59 = vsel %vm825_vm5, 0.9, %v826_v14 }
 0x13d   :  { %658 = vmatpush.msrb.mxu2 %v568_v34  ;;  %v828_v34 = vsub.f32 0.0, %v827_v59 }
 0x13e   :  { %693 = vmatpush.msra.mxu1 %v605_v61 }
 0x13f   :  { %659 = vmatpush.msrb.mxu2 %v567_v28 }
 0x140   :  { %694 = vmatpush.msra.mxu1 %v604_v1 }
 0x141   :  { %660 = vmatpush.msrb.mxu2 %v566_v63 }
 0x142   :  { %695 = vmatpush.msra.mxu1 %v603_v53  ;;  %661 = vmatmul.f32.vlgmr.msrb.gmra.mxu2 %v618_v15 }
 0x143   :  { %774 = vmatpush.bf16.msra.mxu2 %v1127_v38 }
 0x144   :  { %696 = vmatpush.msra.mxu1 %v602_v2 }
 0x146   :  { %697 = vmatpush.msra.mxu1 %v601_v42 }
 0x147   :  { %775 = vmatpush.bf16.msra.mxu2 %v1126_v25 }
 0x148   :  { %698 = vmatpush.msra.mxu1 %v600_v4 }
 0x14a   :  { %699 = vmatpush.msra.mxu1 %v599_v0 }
 0x14b   :  { %776 = vmatpush.bf16.msra.mxu2 %v1125_v7 }
 0x14c   :  { %700 = vmatpush.msra.mxu1 %v598_v9 }
 0x14d   :  { %701 = vmatmul.f32.vlgmr.msra.gmra.mxu1 %v620_v54 }
 0x14f   :  { %777 = vmatpush.bf16.msra.mxu2 %v1124_v3 }
 0x153   :  { %778 = vmatpush.bf16.msra.mxu2 %v1123_v48 }
 0x157   :  { %779 = vmatpush.bf16.msra.mxu2 %v1122_v62 }
 0x15b   :  { %780 = vmatpush.bf16.msra.mxu2 %v1121_v10 }
 0x15f   :  { %781 = vmatpush.bf16.msra.mxu2 %v1120_v46 }
 0x181   :  { %v682_v16 = vpop.f32.mrf.mxu3 }
 0x1a3   :  { %v642_v11 = vpop.f32.mrf.mxu1 }
 0x1c5   :  { %v662_v13 = vpop.f32.mrf.mxu2 }
 0x1c6   :  { %v663_v17 = vadd.f32 %v662_v13, %v642_v11 }
 0x1c8   :  { %v683_v32 = vadd.f32 %v682_v16, %v663_v17 }
 0x1ca   :  { %v702_v41 = vpop.f32.mrf.mxu1 }
 0x1cb   :  { %v703_v18 = vadd.f32 %v702_v41, %v683_v32 }
 0x1cd   :  { %v705_v19 = vpack.c.bf16 %v703_v18, %v703_v18 }
 0x1cf   :  { %782 = vmatmul.bf16.vlgmr.msra.gmra.mxu2 %v705_v19 }
 0x252   :  { %v783_v31 = vpop.f32.mrf.mxu2 }
 0x253   :  { %v784_v22 = vadd.f32 %v1142_v21, %v783_v31 }
 0x255   :  { %v791_v23 = vsel %vm790_vm1, %v784_v22, -1e+30  ;;  %787 = vst [vmem:[#allocation2] sm:$0x3] %v784_v22 }
 0x256   :  { %v793_v26 = vsel %vm792_vm2, %v791_v23, -inf  ;;  %844 = dma.vmem_to_hbm [thread:$0]  %s840_s14, 32, %s842_s12, [#allocation3]  }
 0x257   :  { %794 = vmax.xlane.f32.xlu0 %v793_v26 }
 0x25a   :  { %v785_v27 = vpop.f32.mrf.mxu2 }
 0x2ca   :  { %v795_v29 = vpop.xlane.xlu0 %794 }
 0x2cb   :  { %vm796_vm3 = vcmp.ge.f32.partialorder %v791_v23, %v795_v29  ;;  %v814_v30 = vsub.f32 %v791_v23, %v795_v29 }
 0x2cc   :  { %v797_v33 = vsel %vm796_vm3, %v789_v20, 128 }
 0x2cd   :  { %v815_v35 = vmul.f32 1.442695, %v814_v30  ;;  %v798_v39 = vsel %vm792_vm2, %v797_v33, 2147483647 }
 0x2ce   :  { %v800_v40 = vshra.s32 %v798_v39, 16  ;;  %v799_v45 = vand.u32 65535, %v798_v39 }
 0x2cf   :  { %1143 = vpow2.f32 %v815_v35 }
 0x2d0   :  { %v802_v43 = vcvt.s32.f32 %v800_v40  ;;  %v801_v51 = vcvt.s32.f32 %v799_v45 }
 0x2d2   :  { %803 = vmin.xlane.f32.xlu1 %v802_v43 }
 0x2d5   :  { %v1144_v44 = vpop.eup %1143 }
 0x2d6   :  { %v817_v49 = vsel %vm792_vm2, %v1144_v44, 0.0 }
 0x2d7   :  { %818 = vadd.xlane.f32.xlu0 %v817_v49 }
 0x345   :  { %v804_v50 = vpop.xlane.xlu1 %803 }
 0x346   :  { %vm805_vm4 = vcmp.eq.f32.partialorder %v802_v43, %v804_v50  ;;  %v810_v55 = vcvt.f32.s32 %v804_v50 }
 0x347   :  { %v806_v24 = vsel %vm805_vm4, %v801_v51, inf }
 0x348   :  { %807 = vmin.xlane.f32.xlu1 %v806_v24  ;;  %v811_v63 = vshll.u32 %v810_v55, 16 }
 0x34a   :  { %v819_v52 = vpop.xlane.xlu0 %818 }
 0x34b   :  { %1145 = vlog2.f32 %v819_v52 }
 0x351   :  { %v1146_v58 = vpop.eup %1145 }
 0x352   :  { %v821_v37 = vmul.f32 0.6931472, %v1146_v58 }
 0x354   :  { %v822_v60 = vadd.f32 %v821_v37, %v795_v29 }
 0x356   :  { %v823_v6 = vsub.f32 %v791_v23, %v822_v60 }
 0x358   :  { %v829_v61 = vmul.f32 %v828_v34, %v823_v6 }
 0x35a   :  { %v830_v28 = vsel %vm792_vm2, %v829_v61, 0.0 }
 0x35b   :  { %831 = vadd.xlane.f32.xlu2 %v830_v28 }
 0x3bb   :  { %v808_v1 = vpop.xlane.xlu1 %807 }
 0x3bc   :  { %v809_v15 = vcvt.f32.s32 %v808_v1 }
 0x3be   :  { %v812_v38 = vadd.s32 %v811_v63, %v809_v15 }
 0x3c0   :  { %813 = vst [vmem:[#allocation4] sm:$0x3] %v812_v38 }
 0x3c1   :  { %855 = dma.vmem_to_hbm [thread:$0]  %s851_s0, 32, %s853_s2, [#allocation5]  }
 0x3ce   :  { %v832_v47 = vpop.xlane.xlu2 %831 }
 0x3cf   :  { %833 = vst [vmem:[#allocation6] sm:$0x3] %v832_v47 }
 0x3d0   :  { %866 = dma.vmem_to_hbm [thread:$0]  %s862_s16, 32, %s864_s19, [#allocation5]  }
 0x3d1   :  { %1219 = dma.done.wait [#allocation3], 32  }
 0x3d2   :  { %1220 = vsyncadd [#allocation3], 4294967264 }
 0x3d3   :  { %1221 = dma.done.wait [#allocation5], 64  }
 0x3d4   :  { %1222 = vsyncadd [#allocation5], 4294967232 }
 0x3d5   :  { %879 = vsyncpa [#allocation3], 1 }
 0x3d6   :  { %880 = vsyncpa [#allocation5], 1 }

</bundles_post_ra>
